<compile_context>
chip_gen: v6e
topology: v6e:2x2x1
jax: 0.10.0
libtpu: 0.0.40
codegen_flags: <defaults>
</compile_context>

<pallas_src>
import math

import numpy as np
import jax
import jax.numpy as jnp
from jax.experimental import pallas as pl
from jax.experimental.pallas import tpu as pltpu

# ---------------- model dims (small, deterministic) ----------------
B, S, D = 2, 8, 32          # batch, seq, dim_model
H, DH = 4, 8                # num_heads, dim_head
FF = 64                     # dim_ff
EPS = 1e-5                  # torch.nn.LayerNorm default
NEG = -1e30                 # finite "minus infinity" (Python float -> traced literal)

# ---------------- packed-parameter slab layout (rows, 128 lanes wide) ----------------
R_WQKV = 0                  # (H*D, 3*DH): per head h, rows h*D..h*D+D, cols [q|k|v]
R_WO   = R_WQKV + H * D     # (H*DH, D)  : output projection, head-major rows
R_WI   = R_WO + H * DH      # (D, FF)
R_WO2  = R_WI + D           # (FF, D)
R_BQKV = R_WO2 + FF         # (H*S, 3*DH): qkv bias, replicated across S rows per head
R_VEC  = R_BQKV + H * S     # 7 single-row vectors: bo, bi, bo2, lnA_g, lnA_b, lnF_g, lnF_b
ROWS   = ((R_VEC + 7 + 7) // 8) * 8   # pad to a multiple of 8 sublanes
LANES  = 128


def _layernorm(x, gamma, beta):
    mu = jnp.mean(x, axis=-1, keepdims=True)
    var = jnp.mean((x - mu) ** 2, axis=-1, keepdims=True)
    return (x - mu) * jax.lax.rsqrt(var + EPS) * gamma + beta


def encoder_kernel(hidden_ref, mask_ref, pb_ref, w_ref, out_ref):
    h = hidden_ref[...].reshape(B * S, D)                             # (BS, D)

    # Mask folded once into a finite additive bias.
    mask_add = jnp.where(mask_ref[...] != 0, 0.0, NEG)                # (B, S, S)

    # ---- pre-LN (attention branch) ----
    x = _layernorm(h,
                   w_ref[R_VEC + 3:R_VEC + 4, 0:D],
                   w_ref[R_VEC + 4:R_VEC + 5, 0:D])                   # (BS, D)

    # ---- head-batched QKV projection: one 3-D dot_general, batch dim = B*H ----
    x_bh = jnp.broadcast_to(x.reshape(B, 1, S, D), (B, H, S, D)).reshape(B * H, S, D)
    wqkv_bh = jnp.broadcast_to(
        w_ref[R_WQKV:R_WQKV + H * D, 0:3 * DH].reshape(1, H, D, 3 * DH),
        (B, H, D, 3 * DH)).reshape(B * H, D, 3 * DH)
    bqkv_bh = jnp.broadcast_to(
        w_ref[R_BQKV:R_BQKV + H * S, 0:3 * DH].reshape(1, H, S, 3 * DH),
        (B, H, S, 3 * DH)).reshape(B * H, S, 3 * DH)
    qkv = jnp.einsum('bsd,bdx->bsx', x_bh, wqkv_bh,
                     preferred_element_type=jnp.float32) + bqkv_bh    # (BH, S, 3*DH)

    q = qkv[:, :, 0:DH]                                               # (BH, S, DH)
    k = qkv[:, :, DH:2 * DH]
    v = qkv[:, :, 2 * DH:3 * DH]

    # ---- scores + position bias + mask, one softmax over (B, H, S, S) ----
    scale = 1.0 / math.sqrt(DH)
    s = jnp.einsum('bqd,bkd->bqk', q, k,
                   preferred_element_type=jnp.float32)                # (BH, S, S)
    s = s.reshape(B, H, S, S) * scale + pb_ref[...] + mask_add[:, None, :, :]
    m = jnp.max(s, axis=-1, keepdims=True)
    e = jnp.exp(s - m)
    p = e / jnp.sum(e, axis=-1, keepdims=True)                        # exact divide
    p = p.reshape(B * H, S, S)

    # ---- PV and head-batched output projection; heads merged by a leading-axis sum ----
    o = jnp.einsum('bqk,bkd->bqd', p, v,
                   preferred_element_type=jnp.float32)                # (BH, S, DH)
    wo_bh = jnp.broadcast_to(
        w_ref[R_WO:R_WO + H * DH, 0:D].reshape(1, H, DH, D),
        (B, H, DH, D)).reshape(B * H, DH, D)
    attn_part = jnp.einsum('bsd,bdm->bsm', o, wo_bh,
                           preferred_element_type=jnp.float32)        # (BH, S, D)
    attn = jnp.sum(attn_part.reshape(B, H, S, D), axis=1).reshape(B * S, D)
    attn = attn + w_ref[R_VEC + 0:R_VEC + 1, 0:D]                     # + bo

    h1 = h + attn                                                     # residual 1

    # ---- pre-LN feed-forward ----
    x2 = _layernorm(h1,
                    w_ref[R_VEC + 5:R_VEC + 6, 0:D],
                    w_ref[R_VEC + 6:R_VEC + 7, 0:D])
    ff = jnp.maximum(
        jnp.dot(x2, w_ref[R_WI:R_WI + D, 0:FF],
                preferred_element_type=jnp.float32)
        + w_ref[R_VEC + 1:R_VEC + 2, 0:FF], 0.0)
    ff = jnp.dot(ff, w_ref[R_WO2:R_WO2 + FF, 0:D],
                 preferred_element_type=jnp.float32) + w_ref[R_VEC + 2:R_VEC + 3, 0:D]

    out_ref[...] = h1 + ff                                            # single (BS, D) store


def pack_params(params):
    """One-time packing of all weights/biases/LN params into one (ROWS, 128) f32 slab."""
    (lnA_g, lnA_b, wq, bq, wk, bk, wv, bv, wo, bo,
     lnF_g, lnF_b, wi, bi, wo2, bo2) = [np.asarray(p, np.float32) for p in params]
    slab = np.zeros((ROWS, LANES), np.float32)
    for hh in range(H):
        sl = slice(hh * DH, (hh + 1) * DH)
        # per-head [q|k|v] weight block, stacked over heads along rows
        blk = np.concatenate([wq[:, sl], wk[:, sl], wv[:, sl]], axis=1)     # (D, 3*DH)
        slab[R_WQKV + hh * D:R_WQKV + (hh + 1) * D, 0:3 * DH] = blk
        # per-head qkv bias, replicated across the S sequence rows
        bblk = np.concatenate([bq[0, sl], bk[0, sl], bv[0, sl]], axis=0)    # (3*DH,)
        slab[R_BQKV + hh * S:R_BQKV + (hh + 1) * S, 0:3 * DH] = bblk[None, :]
        # per-head slice of the output projection
        slab[R_WO + hh * DH:R_WO + (hh + 1) * DH, 0:D] = wo[sl, :]
    slab[R_WI:R_WI + D, 0:FF] = wi
    slab[R_WO2:R_WO2 + FF, 0:D] = wo2
    slab[R_VEC + 0, 0:D] = bo[0]
    slab[R_VEC + 1, 0:FF] = bi[0]
    slab[R_VEC + 2, 0:D] = bo2[0]
    slab[R_VEC + 3, 0:D] = lnA_g[0]
    slab[R_VEC + 4, 0:D] = lnA_b[0]
    slab[R_VEC + 5, 0:D] = lnF_g[0]
    slab[R_VEC + 6, 0:D] = lnF_b[0]
    return jnp.asarray(slab)


def transformer_encoder(hidden, mask_i32, pos_bias, param_slab):
    in_specs = [
        pl.BlockSpec((B, S, D), lambda i: (0, 0, 0)),          # hidden
        pl.BlockSpec((B, S, S), lambda i: (0, 0, 0)),          # mask (int32 0/1)
        pl.BlockSpec((B, H, S, S), lambda i: (0, 0, 0, 0)),    # position_bias
        pl.BlockSpec((ROWS, LANES), lambda i: (0, 0)),         # packed parameter slab
    ]
    out = pl.pallas_call(
        encoder_kernel,
        out_shape=jax.ShapeDtypeStruct((B * S, D), jnp.float32),
        grid_spec=pltpu.PrefetchScalarGridSpec(
            num_scalar_prefetch=0,
            grid=(1,),                                         # whole batch resident in VMEM
            in_specs=in_specs,
            out_specs=pl.BlockSpec((B * S, D), lambda i: (0, 0)),
        ),
        compiler_params=pltpu.CompilerParams(
            dimension_semantics=("arbitrary",)),
    )(hidden, mask_i32, pos_bias, param_slab)
    return out.reshape(B, S, D)


# ---------------- pure-JAX reference (mirrors the PyTorch forward) ----------------
def reference(hidden, mask_bool, pos_bias, params):
    (lnA_g, lnA_b, wq, bq, wk, bk, wv, bv, wo, bo,
     lnF_g, lnF_b, wi, bi, wo2, bo2) = params
    g = lambda p: p[0]

    def ln(x, gamma, beta):
        mu = jnp.mean(x, -1, keepdims=True)
        var = jnp.mean((x - mu) ** 2, -1, keepdims=True)
        return (x - mu) * jax.lax.rsqrt(var + EPS) * gamma + beta

    x = ln(hidden, g(lnA_g), g(lnA_b))
    q = (x @ wq + g(bq)).reshape(B, S, H, DH).transpose(0, 2, 1, 3)
    k = (x @ wk + g(bk)).reshape(B, S, H, DH).transpose(0, 2, 1, 3)
    v = (x @ wv + g(bv)).reshape(B, S, H, DH).transpose(0, 2, 1, 3)
    s = jnp.einsum("bhqd,bhkd->bhqk", q, k) / math.sqrt(DH) + pos_bias
    m = mask_bool[:, None, :, :]
    s = jnp.where(m, s, -jnp.inf)
    p = jax.nn.softmax(s, axis=-1)
    p = jnp.where(m, p, 0.0)
    o = jnp.einsum("bhqk,bhkd->bhqd", p, v).transpose(0, 2, 1, 3).reshape(B, S, H * DH)
    attn = o @ wo + g(bo)
    h1 = hidden + attn
    x2 = ln(h1, g(lnF_g), g(lnF_b))
    ff = jnp.maximum(x2 @ wi + g(bi), 0.0) @ wo2 + g(bo2)
    return h1 + ff


if __name__ == "__main__":
    key = jax.random.PRNGKey(0)
    ks = jax.random.split(key, 20)

    hidden = jax.random.normal(ks[0], (B, S, D), jnp.float32)
    # causal mask: every row has at least one True (matches the -1e30 mask-fold caveat)
    mask_bool = jnp.tril(jnp.ones((S, S), jnp.bool_))[None].repeat(B, axis=0)
    mask_i32 = mask_bool.astype(jnp.int32)
    pos_bias = 0.1 * jax.random.normal(ks[1], (B, H, S, S), jnp.float32)

    def w(k, shape):  # deterministic small weights, already [in, out]
        return 0.05 * jax.random.normal(k, shape, jnp.float32)

    params = (
        1.0 + 0.05 * jax.random.normal(ks[2], (1, D), jnp.float32),  # ln_attn gamma
        0.05 * jax.random.normal(ks[3], (1, D), jnp.float32),        # ln_attn beta
        w(ks[4], (D, H * DH)),  0.05 * jax.random.normal(ks[5], (1, H * DH)),   # Wq, bq
        w(ks[6], (D, H * DH)),  0.05 * jax.random.normal(ks[7], (1, H * DH)),   # Wk, bk
        w(ks[8], (D, H * DH)),  0.05 * jax.random.normal(ks[9], (1, H * DH)),   # Wv, bv
        w(ks[10], (H * DH, D)), 0.05 * jax.random.normal(ks[11], (1, D)),       # Wo, bo
        1.0 + 0.05 * jax.random.normal(ks[12], (1, D), jnp.float32),            # ln_ff gamma
        0.05 * jax.random.normal(ks[13], (1, D), jnp.float32),                  # ln_ff beta
        w(ks[14], (D, FF)),     0.05 * jax.random.normal(ks[15], (1, FF)),      # W_in, b_in
        w(ks[16], (FF, D)),     0.05 * jax.random.normal(ks[17], (1, D)),       # W_out, b_out
    )

    # One-time parameter packing (init-time, outside the per-call forward path).
    param_slab = pack_params(params)

    out = transformer_encoder(hidden, mask_i32, pos_bias, param_slab)
    out = jax.block_until_ready(out)

    ref = reference(hidden, mask_bool, pos_bias, params)
    err = float(jnp.max(jnp.abs(out - ref)))
    assert jnp.allclose(out, ref, atol=1e-4, rtol=1e-4), err

    print("KERNEL_OK")
</pallas_src>

<mosaic_0001>
module attributes {stable_mosaic.version = 11 : i64} {
  func.func @encoder_kernel(%arg0: i32, %arg1: memref<2x8x32xf32, #tpu.memory_space<vmem>>, %arg2: memref<2x8x8xi32, #tpu.memory_space<vmem>>, %arg3: memref<2x4x8x8xf32, #tpu.memory_space<vmem>>, %arg4: memref<296x128xf32, #tpu.memory_space<vmem>>, %arg5: memref<16x32xf32, #tpu.memory_space<vmem>>) attributes {dimension_semantics = [#tpu.dimension_semantics<arbitrary>], iteration_bounds = array<i64: 1>, scalar_prefetch = 0 : i64, scratch_operands = 0 : i64, tpu.core_type = #tpu.core_type<tc>, window_params = [{pipeline_mode = #tpu.pipeline_mode<synchronous>, transform_indices = @transform_0, window_bounds = array<i64: 2, 8, 32>}, {pipeline_mode = #tpu.pipeline_mode<synchronous>, transform_indices = @transform_1, window_bounds = array<i64: 2, 8, 8>}, {pipeline_mode = #tpu.pipeline_mode<synchronous>, transform_indices = @transform_2, window_bounds = array<i64: 2, 4, 8, 8>}, {pipeline_mode = #tpu.pipeline_mode<synchronous>, transform_indices = @transform_3, window_bounds = array<i64: 296, 128>}, {pipeline_mode = #tpu.pipeline_mode<synchronous>, transform_indices = @transform_4, window_bounds = array<i64: 16, 32>}]} {
    %c0 = arith.constant 0 : index
    %c0_0 = arith.constant 0 : index
    %c0_1 = arith.constant 0 : index
    %0 = vector.load %arg1[%c0, %c0_0, %c0_1] : memref<2x8x32xf32, #tpu.memory_space<vmem>>, vector<2x8x32xf32>
    %1 = vector.shape_cast %0 : vector<2x8x32xf32> to vector<16x32xf32>
    %c0_2 = arith.constant 0 : index
    %c0_3 = arith.constant 0 : index
    %c0_4 = arith.constant 0 : index
    %2 = vector.load %arg2[%c0_2, %c0_3, %c0_4] : memref<2x8x8xi32, #tpu.memory_space<vmem>>, vector<2x8x8xi32>
    %c0_i32 = arith.constant 0 : i32
    %3 = vector.broadcast %c0_i32 : i32 to vector<2x8x8xi32>
    %4 = arith.cmpi ne, %2, %3 : vector<2x8x8xi32>
    %cst = arith.constant 0.000000e+00 : f32
    %cst_5 = arith.constant -1.000000e+30 : f32
    %5 = vector.broadcast %cst : f32 to vector<2x8x8xf32>
    %6 = vector.broadcast %cst_5 : f32 to vector<2x8x8xf32>
    %7 = arith.select %4, %5, %6 : vector<2x8x8xi1>, vector<2x8x8xf32>
    %c291 = arith.constant 291 : index
    %c0_6 = arith.constant 0 : index
    %8 = vector.load %arg4[%c291, %c0_6] : memref<296x128xf32, #tpu.memory_space<vmem>>, vector<1x32xf32>
    %c292 = arith.constant 292 : index
    %c0_7 = arith.constant 0 : index
    %9 = vector.load %arg4[%c292, %c0_7] : memref<296x128xf32, #tpu.memory_space<vmem>>, vector<1x32xf32>
    %cst_8 = arith.constant dense<0.000000e+00> : vector<16xf32>
    %10 = vector.multi_reduction <add>, %1, %cst_8 [1] : vector<16x32xf32> to vector<16xf32>
    %11 = vector.shape_cast %10 : vector<16xf32> to vector<16x1xf32>
    %cst_9 = arith.constant 3.200000e+01 : f32
    %12 = vector.broadcast %cst_9 : f32 to vector<16x1xf32>
    %13 = arith.divf %11, %12 : vector<16x1xf32>
    %14 = vector.broadcast %13 : vector<16x1xf32> to vector<16x32xf32>
    %15 = arith.subf %1, %14 : vector<16x32xf32>
    %16 = arith.mulf %15, %15 : vector<16x32xf32>
    %cst_10 = arith.constant dense<0.000000e+00> : vector<16xf32>
    %17 = vector.multi_reduction <add>, %16, %cst_10 [1] : vector<16x32xf32> to vector<16xf32>
    %18 = vector.shape_cast %17 : vector<16xf32> to vector<16x1xf32>
    %cst_11 = arith.constant 3.200000e+01 : f32
    %19 = vector.broadcast %cst_11 : f32 to vector<16x1xf32>
    %20 = arith.divf %18, %19 : vector<16x1xf32>
    %21 = vector.broadcast %13 : vector<16x1xf32> to vector<16x32xf32>
    %22 = arith.subf %1, %21 : vector<16x32xf32>
    %cst_12 = arith.constant 9.99999974E-6 : f32
    %23 = vector.broadcast %cst_12 : f32 to vector<16x1xf32>
    %24 = arith.addf %20, %23 : vector<16x1xf32>
    %25 = math.rsqrt %24 : vector<16x1xf32>
    %26 = vector.broadcast %25 : vector<16x1xf32> to vector<16x32xf32>
    %27 = arith.mulf %22, %26 : vector<16x32xf32>
    %28 = vector.broadcast %8 : vector<1x32xf32> to vector<16x32xf32>
    %29 = arith.mulf %27, %28 : vector<16x32xf32>
    %30 = vector.broadcast %9 : vector<1x32xf32> to vector<16x32xf32>
    %31 = arith.addf %29, %30 : vector<16x32xf32>
    %32 = vector.shape_cast %31 : vector<16x32xf32> to vector<2x1x8x32xf32>
    %33 = vector.shape_cast %32 : vector<2x1x8x32xf32> to vector<2x1x8x32xf32>
    %34 = vector.broadcast %33 : vector<2x1x8x32xf32> to vector<2x4x8x32xf32>
    %35 = vector.shape_cast %34 : vector<2x4x8x32xf32> to vector<8x8x32xf32>
    %c0_13 = arith.constant 0 : index
    %c0_14 = arith.constant 0 : index
    %36 = vector.load %arg4[%c0_13, %c0_14] : memref<296x128xf32, #tpu.memory_space<vmem>>, vector<128x24xf32>
    %37 = vector.shape_cast %36 : vector<128x24xf32> to vector<1x4x32x24xf32>
    %38 = vector.shape_cast %37 : vector<1x4x32x24xf32> to vector<1x4x32x24xf32>
    %39 = vector.broadcast %38 : vector<1x4x32x24xf32> to vector<2x4x32x24xf32>
    %40 = vector.shape_cast %39 : vector<2x4x32x24xf32> to vector<8x32x24xf32>
    %c256 = arith.constant 256 : index
    %c0_15 = arith.constant 0 : index
    %41 = vector.load %arg4[%c256, %c0_15] : memref<296x128xf32, #tpu.memory_space<vmem>>, vector<32x24xf32>
    %42 = vector.shape_cast %41 : vector<32x24xf32> to vector<1x4x8x24xf32>
    %43 = vector.shape_cast %42 : vector<1x4x8x24xf32> to vector<1x4x8x24xf32>
    %44 = vector.broadcast %43 : vector<1x4x8x24xf32> to vector<2x4x8x24xf32>
    %45 = vector.shape_cast %44 : vector<2x4x8x24xf32> to vector<8x8x24xf32>
    "tpu.trace_start"() <{level = 10 : i32, message = "bsd,bdx->bsx"}> : () -> ()
    %cst_16 = arith.constant dense<0.000000e+00> : vector<8x8x24xf32>
    %46 = tpu.matmul %35, %40, %cst_16 {dimension_numbers = #tpu.dot_dimension_numbers<[2], [1], [1], [2], [0, 0, 0, 1, 1, 2], [0], [0]>} : vector<8x8x32xf32>, vector<8x32x24xf32>, vector<8x8x24xf32> -> vector<8x8x24xf32>
    "tpu.trace_stop"() : () -> ()
    %47 = arith.addf %46, %45 : vector<8x8x24xf32>
    %48 = vector.extract_strided_slice %47 {offsets = [0, 0, 0], sizes = [8, 8, 8], strides = [1, 1, 1]} : vector<8x8x24xf32> to vector<8x8x8xf32>
    %49 = vector.extract_strided_slice %47 {offsets = [0, 0, 8], sizes = [8, 8, 8], strides = [1, 1, 1]} : vector<8x8x24xf32> to vector<8x8x8xf32>
    %50 = vector.extract_strided_slice %47 {offsets = [0, 0, 16], sizes = [8, 8, 8], strides = [1, 1, 1]} : vector<8x8x24xf32> to vector<8x8x8xf32>
    "tpu.trace_start"() <{level = 10 : i32, message = "bqd,bkd->bqk"}> : () -> ()
    %cst_17 = arith.constant dense<0.000000e+00> : vector<8x8x8xf32>
    %51 = tpu.matmul %48, %49, %cst_17 {dimension_numbers = #tpu.dot_dimension_numbers<[2], [2], [1], [1], [0, 0, 0, 1, 1, 1], [0], [0]>} : vector<8x8x8xf32>, vector<8x8x8xf32>, vector<8x8x8xf32> -> vector<8x8x8xf32>
    "tpu.trace_stop"() : () -> ()
    %52 = vector.shape_cast %51 : vector<8x8x8xf32> to vector<2x4x8x8xf32>
    %cst_18 = arith.constant 0.353553385 : f32
    %53 = vector.broadcast %cst_18 : f32 to vector<2x4x8x8xf32>
    %54 = arith.mulf %52, %53 : vector<2x4x8x8xf32>
    %c0_19 = arith.constant 0 : index
    %c0_20 = arith.constant 0 : index
    %c0_21 = arith.constant 0 : index
    %c0_22 = arith.constant 0 : index
    %55 = vector.load %arg3[%c0_19, %c0_20, %c0_21, %c0_22] : memref<2x4x8x8xf32, #tpu.memory_space<vmem>>, vector<2x4x8x8xf32>
    %56 = arith.addf %54, %55 : vector<2x4x8x8xf32>
    %57 = vector.shape_cast %7 : vector<2x8x8xf32> to vector<2x1x8x8xf32>
    %58 = vector.broadcast %57 : vector<2x1x8x8xf32> to vector<2x4x8x8xf32>
    %59 = arith.addf %56, %58 : vector<2x4x8x8xf32>
    %cst_23 = arith.constant dense<0xFF800000> : vector<2x4x8xf32>
    %60 = vector.multi_reduction <maximumf>, %59, %cst_23 [3] : vector<2x4x8x8xf32> to vector<2x4x8xf32>
    %61 = vector.shape_cast %60 : vector<2x4x8xf32> to vector<2x4x8x1xf32>
    %62 = vector.broadcast %61 : vector<2x4x8x1xf32> to vector<2x4x8x8xf32>
    %63 = arith.subf %59, %62 : vector<2x4x8x8xf32>
    %64 = math.exp %63 : vector<2x4x8x8xf32>
    %cst_24 = arith.constant dense<0.000000e+00> : vector<2x4x8xf32>
    %65 = vector.multi_reduction <add>, %64, %cst_24 [3] : vector<2x4x8x8xf32> to vector<2x4x8xf32>
    %66 = vector.shape_cast %65 : vector<2x4x8xf32> to vector<2x4x8x1xf32>
    %67 = vector.broadcast %66 : vector<2x4x8x1xf32> to vector<2x4x8x8xf32>
    %68 = arith.divf %64, %67 : vector<2x4x8x8xf32>
    %69 = vector.shape_cast %68 : vector<2x4x8x8xf32> to vector<8x8x8xf32>
    "tpu.trace_start"() <{level = 10 : i32, message = "bqk,bkd->bqd"}> : () -> ()
    %cst_25 = arith.constant dense<0.000000e+00> : vector<8x8x8xf32>
    %70 = tpu.matmul %69, %50, %cst_25 {dimension_numbers = #tpu.dot_dimension_numbers<[2], [1], [1], [2], [0, 0, 0, 1, 1, 2], [0], [0]>} : vector<8x8x8xf32>, vector<8x8x8xf32>, vector<8x8x8xf32> -> vector<8x8x8xf32>
    "tpu.trace_stop"() : () -> ()
    %c128 = arith.constant 128 : index
    %c0_26 = arith.constant 0 : index
    %71 = vector.load %arg4[%c128, %c0_26] : memref<296x128xf32, #tpu.memory_space<vmem>>, vector<32x32xf32>
    %72 = vector.shape_cast %71 : vector<32x32xf32> to vector<1x4x8x32xf32>
    %73 = vector.shape_cast %72 : vector<1x4x8x32xf32> to vector<1x4x8x32xf32>
    %74 = vector.broadcast %73 : vector<1x4x8x32xf32> to vector<2x4x8x32xf32>
    %75 = vector.shape_cast %74 : vector<2x4x8x32xf32> to vector<8x8x32xf32>
    "tpu.trace_start"() <{level = 10 : i32, message = "bsd,bdm->bsm"}> : () -> ()
    %cst_27 = arith.constant dense<0.000000e+00> : vector<8x8x32xf32>
    %76 = tpu.matmul %70, %75, %cst_27 {dimension_numbers = #tpu.dot_dimension_numbers<[2], [1], [1], [2], [0, 0, 0, 1, 1, 2], [0], [0]>} : vector<8x8x8xf32>, vector<8x8x32xf32>, vector<8x8x32xf32> -> vector<8x8x32xf32>
    "tpu.trace_stop"() : () -> ()
    %77 = vector.shape_cast %76 : vector<8x8x32xf32> to vector<2x4x8x32xf32>
    %cst_28 = arith.constant dense<0.000000e+00> : vector<2x8x32xf32>
    %78 = vector.multi_reduction <add>, %77, %cst_28 [1] : vector<2x4x8x32xf32> to vector<2x8x32xf32>
    %79 = vector.shape_cast %78 : vector<2x8x32xf32> to vector<16x32xf32>
    %c288 = arith.constant 288 : index
    %c0_29 = arith.constant 0 : index
    %80 = vector.load %arg4[%c288, %c0_29] : memref<296x128xf32, #tpu.memory_space<vmem>>, vector<1x32xf32>
    %81 = vector.broadcast %80 : vector<1x32xf32> to vector<16x32xf32>
    %82 = arith.addf %79, %81 : vector<16x32xf32>
    %83 = arith.addf %1, %82 : vector<16x32xf32>
    %c293 = arith.constant 293 : index
    %c0_30 = arith.constant 0 : index
    %84 = vector.load %arg4[%c293, %c0_30] : memref<296x128xf32, #tpu.memory_space<vmem>>, vector<1x32xf32>
    %c294 = arith.constant 294 : index
    %c0_31 = arith.constant 0 : index
    %85 = vector.load %arg4[%c294, %c0_31] : memref<296x128xf32, #tpu.memory_space<vmem>>, vector<1x32xf32>
    %cst_32 = arith.constant dense<0.000000e+00> : vector<16xf32>
    %86 = vector.multi_reduction <add>, %83, %cst_32 [1] : vector<16x32xf32> to vector<16xf32>
    %87 = vector.shape_cast %86 : vector<16xf32> to vector<16x1xf32>
    %cst_33 = arith.constant 3.200000e+01 : f32
    %88 = vector.broadcast %cst_33 : f32 to vector<16x1xf32>
    %89 = arith.divf %87, %88 : vector<16x1xf32>
    %90 = vector.broadcast %89 : vector<16x1xf32> to vector<16x32xf32>
    %91 = arith.subf %83, %90 : vector<16x32xf32>
    %92 = arith.mulf %91, %91 : vector<16x32xf32>
    %cst_34 = arith.constant dense<0.000000e+00> : vector<16xf32>
    %93 = vector.multi_reduction <add>, %92, %cst_34 [1] : vector<16x32xf32> to vector<16xf32>
    %94 = vector.shape_cast %93 : vector<16xf32> to vector<16x1xf32>
    %cst_35 = arith.constant 3.200000e+01 : f32
    %95 = vector.broadcast %cst_35 : f32 to vector<16x1xf32>
    %96 = arith.divf %94, %95 : vector<16x1xf32>
    %97 = vector.broadcast %89 : vector<16x1xf32> to vector<16x32xf32>
    %98 = arith.subf %83, %97 : vector<16x32xf32>
    %cst_36 = arith.constant 9.99999974E-6 : f32
    %99 = vector.broadcast %cst_36 : f32 to vector<16x1xf32>
    %100 = arith.addf %96, %99 : vector<16x1xf32>
    %101 = math.rsqrt %100 : vector<16x1xf32>
    %102 = vector.broadcast %101 : vector<16x1xf32> to vector<16x32xf32>
    %103 = arith.mulf %98, %102 : vector<16x32xf32>
    %104 = vector.broadcast %84 : vector<1x32xf32> to vector<16x32xf32>
    %105 = arith.mulf %103, %104 : vector<16x32xf32>
    %106 = vector.broadcast %85 : vector<1x32xf32> to vector<16x32xf32>
    %107 = arith.addf %105, %106 : vector<16x32xf32>
    %c160 = arith.constant 160 : index
    %c0_37 = arith.constant 0 : index
    %108 = vector.load %arg4[%c160, %c0_37] : memref<296x128xf32, #tpu.memory_space<vmem>>, vector<32x64xf32>
    %cst_38 = arith.constant dense<0.000000e+00> : vector<16x64xf32>
    %109 = tpu.matmul %107, %108, %cst_38 {dimension_numbers = #tpu.dot_dimension_numbers<[1], [0], [0], [1], [0, 0, 1, 1], [], []>} : vector<16x32xf32>, vector<32x64xf32>, vector<16x64xf32> -> vector<16x64xf32>
    %c289 = arith.constant 289 : index
    %c0_39 = arith.constant 0 : index
    %110 = vector.load %arg4[%c289, %c0_39] : memref<296x128xf32, #tpu.memory_space<vmem>>, vector<1x64xf32>
    %111 = vector.broadcast %110 : vector<1x64xf32> to vector<16x64xf32>
    %112 = arith.addf %109, %111 : vector<16x64xf32>
    %cst_40 = arith.constant 0.000000e+00 : f32
    %113 = vector.broadcast %cst_40 : f32 to vector<16x64xf32>
    %114 = arith.maximumf %112, %113 : vector<16x64xf32>
    %c192 = arith.constant 192 : index
    %c0_41 = arith.constant 0 : index
    %115 = vector.load %arg4[%c192, %c0_41] : memref<296x128xf32, #tpu.memory_space<vmem>>, vector<64x32xf32>
    %cst_42 = arith.constant dense<0.000000e+00> : vector<16x32xf32>
    %116 = tpu.matmul %114, %115, %cst_42 {dimension_numbers = #tpu.dot_dimension_numbers<[1], [0], [0], [1], [0, 0, 1, 1], [], []>} : vector<16x64xf32>, vector<64x32xf32>, vector<16x32xf32> -> vector<16x32xf32>
    %c290 = arith.constant 290 : index
    %c0_43 = arith.constant 0 : index
    %117 = vector.load %arg4[%c290, %c0_43] : memref<296x128xf32, #tpu.memory_space<vmem>>, vector<1x32xf32>
    %118 = vector.broadcast %117 : vector<1x32xf32> to vector<16x32xf32>
    %119 = arith.addf %116, %118 : vector<16x32xf32>
    %120 = arith.addf %83, %119 : vector<16x32xf32>
    %c0_44 = arith.constant 0 : index
    %c0_45 = arith.constant 0 : index
    %121 = vector.load %arg5[%c0_44, %c0_45] : memref<16x32xf32, #tpu.memory_space<vmem>>, vector<16x32xf32>
    tpu.vector_store %arg5[%c0_44, %c0_45], %120 {strides = array<i32>} : memref<16x32xf32, #tpu.memory_space<vmem>>, vector<16x32xf32>,
    return
  }
  func.func @transform_0(%arg0: i32) -> (i32, i32, i32) {
    %c0_i32 = arith.constant 0 : i32
    %c0_i32_0 = arith.constant 0 : i32
    %c0_i32_1 = arith.constant 0 : i32
    %c0_i32_2 = arith.constant 0 : i32
    return %c0_i32, %c0_i32_0, %c0_i32_1 : i32, i32, i32
  }
  func.func @transform_1(%arg0: i32) -> (i32, i32, i32) {
    %c0_i32 = arith.constant 0 : i32
    %c0_i32_0 = arith.constant 0 : i32
    %c0_i32_1 = arith.constant 0 : i32
    %c0_i32_2 = arith.constant 0 : i32
    return %c0_i32, %c0_i32_0, %c0_i32_1 : i32, i32, i32
  }
  func.func @transform_2(%arg0: i32) -> (i32, i32, i32, i32) {
    %c0_i32 = arith.constant 0 : i32
    %c0_i32_0 = arith.constant 0 : i32
    %c0_i32_1 = arith.constant 0 : i32
    %c0_i32_2 = arith.constant 0 : i32
    %c0_i32_3 = arith.constant 0 : i32
    return %c0_i32, %c0_i32_0, %c0_i32_1, %c0_i32_2 : i32, i32, i32, i32
  }
  func.func @transform_3(%arg0: i32) -> (i32, i32) {
    %c0_i32 = arith.constant 0 : i32
    %c0_i32_0 = arith.constant 0 : i32
    %c0_i32_1 = arith.constant 0 : i32
    return %c0_i32, %c0_i32_0 : i32, i32
  }
  func.func @transform_4(%arg0: i32) -> (i32, i32) {
    %c0_i32 = arith.constant 0 : i32
    %c0_i32_0 = arith.constant 0 : i32
    %c0_i32_1 = arith.constant 0 : i32
    return %c0_i32, %c0_i32_0 : i32, i32
  }
}

</mosaic_0001>

<bundles_post_ra>
// kernel: tpu_custom_call.1
= control target key start
LH: loop header
LB: loop body
LE: loop exit
PB: predicated region body
PF: predicated region fallthrough
CT: control target
= control target key end

     0   :  { %9 = vsyncpa [#allocation3], 0  ;;  %s3856_s0 = inlined_call_operand.hbm [shape: f32[2,8,32], index: 0, kind: input, shape index: {}]   ;;  %s3857_s1 = inlined_call_operand.hbm [shape: s32[2,8,8], index: 1, kind: input, shape index: {}]   ;;  %s3858_s2 = inlined_call_operand.hbm [shape: f32[2,4,8,8], index: 2, kind: input, shape index: {}]   ;;  %s3859_s3 = inlined_call_operand.hbm [shape: f32[296,128], index: 3, kind: input, shape index: {}]   ;;  %s3860_s4 = inlined_call_operand.hbm [shape: f32[16,32], index: 4, kind: output, shape index: {}]  }
   0x1   :  { %10 = vsyncpa [#allocation6], 0 }
   0x2   :  { %11 = vsyncpa [#allocation9], 0 }
   0x3   :  { %12 = vsyncpa [#allocation4], 0  ;;  %s3468_s15 = smov [#allocation5]   ;;  %s3469_s17 = smov [#allocation2]  }
   0x4   :  { %s30_s16 = sshll.u32 %s3468_s15, 4  ;;  %s18_s18 = sshll.u32 %s3469_s17, 4  ;;  %s31_s16 = int_to_ptr.vmem [resolvable:$true] %s30_s16  ;;  %s19_s18 = int_to_ptr.vmem [resolvable:$true] %s18_s18 }
   0x5   :  { %s3368_s19 = scalar_lea.vmem %s31_s16, 256  ;;  %p3373_p1 = scmp.lt.s32.totalorder %s31_s16, %s31_s16 }
   0x6   :  { %p3369_p0 = scmp.ne.s32.totalorder %s31_s16, %s3368_s19  ;;  %p3374_p2 = scmp.lt.s32.totalorder %s3368_s19, %s3368_s19 }
   0x8   :  { %p3375_p3 = por %p3374_p2, %p3373_p1 }
   0xa   :  { %p3376_p4 = pnand %p3375_p3, %p3369_p0 }
   0xc   :  { %3379 = shalt.err (!%p3376_p4)
}
   0xd   :  { %s3470_s20 = smov 128   ;;  %s3471_s21 = smov 8  }
   0xe   :  { %36 = dma.hbm_to_vmem [thread:$0]  %s3857_s1, 256, %s31_s16, [#allocation6], %s3470_s20, %s3470_s20, %s3471_s21  }
   0xf   :  { %s3388_s24 = scalar_lea.vmem %s19_s18, 256  ;;  %p3393_p6 = scmp.lt.s32.totalorder %s19_s18, %s19_s18 }
  0x10   :  { %p3389_p5 = scmp.ne.s32.totalorder %s19_s18, %s3388_s24  ;;  %p3394_p7 = scmp.lt.s32.totalorder %s3388_s24, %s3388_s24 }
  0x12   :  { %p3395_p8 = por %p3394_p7, %p3393_p6 }
  0x14   :  { %p3396_p9 = pnand %p3395_p8, %p3389_p5 }
  0x16   :  { %3399 = shalt.err (!%p3396_p9)
}
  0x17   :  { %24 = dma.hbm_to_vmem [thread:$0]  %s3856_s0, 256, %s19_s18, [#allocation3], %s3470_s20, %s3470_s20, %s3471_s21  }
  0x18   :  { %s3472_s27 = smov [#allocation7]   ;;  %s3473_s29 = smov [#allocation8]  }
  0x19   :  { %s42_s28 = sshll.u32 %s3472_s27, 4  ;;  %s54_s30 = sshll.u32 %s3473_s29, 4  ;;  %s43_s28 = int_to_ptr.vmem [resolvable:$true] %s42_s28  ;;  %s55_s30 = int_to_ptr.vmem [resolvable:$true] %s54_s30 }
  0x1a   :  { %s3408_s1 = scalar_lea.vmem %s43_s28, 1024  ;;  %p3413_p11 = scmp.lt.s32.totalorder %s43_s28, %s43_s28 }
  0x1b   :  { %p3409_p10 = scmp.ne.s32.totalorder %s43_s28, %s3408_s1  ;;  %p3414_p12 = scmp.lt.s32.totalorder %s3408_s1, %s3408_s1 }
  0x1d   :  { %p3415_p13 = por %p3414_p12, %p3413_p11 }
  0x1f   :  { %p3416_p0 = pnand %p3415_p13, %p3409_p10 }
  0x21   :  { %3419 = shalt.err (!%p3416_p0)
}
  0x22   :  { %48 = dma.hbm_to_vmem [thread:$0]  %s3858_s2, 1024, %s43_s28, [#allocation6], %s3470_s20, %s3470_s20, %s3471_s21  }
  0x23   :  { %s3428_s0 = scalar_lea.vmem %s55_s30, 4736  ;;  %p3433_p2 = scmp.lt.s32.totalorder %s55_s30, %s55_s30 }
  0x24   :  { %p3429_p1 = scmp.ne.s32.totalorder %s55_s30, %s3428_s0  ;;  %p3434_p3 = scmp.lt.s32.totalorder %s3428_s0, %s3428_s0 }
  0x26   :  { %p3435_p4 = por %p3434_p3, %p3433_p2 }
  0x28   :  { %p3436_p5 = pnand %p3435_p4, %p3429_p1 }
  0x2a   :  { %3439 = shalt.err (!%p3436_p5)
}
  0x2b   :  { %60 = dma.hbm_to_vmem [thread:$0]  %s3859_s3, 4736, %s55_s30, [#allocation9], %s3470_s20, %s3470_s20, %s3471_s21  }
  0x2c   :  { %3460 = dma.done.wait [#allocation3], 256  }
  0x2d   :  { %3461 = vsyncadd [#allocation3], 4294967040 }
  0x2e   :  { %3462 = dma.done.wait [#allocation6], 1280  }
  0x2f   :  { %3463 = vsyncadd [#allocation6], 4294966016 }
  0x30   :  { %3464 = dma.done.wait [#allocation9], 4736  }
  0x31   :  { %3465 = vsyncadd [#allocation9], 4294962560  ;;  %vm83_vm0 = vcmask 261120   ;;  %v3529_v0 = vld [vmem:[#allocation2] sm:$0xff]  ;;  %v3531_v1 = vld [vmem:[#allocation2 + $0x8] sm:$0xff]  ;;  %v3474_v16 = vmov 0.0  }
  0x32   :  { %v84_v2 = vsel %vm83_vm0, %v3529_v0, 0.0  ;;  %v87_v3 = vsel %vm83_vm0, %v3531_v1, 0.0  ;;  %v3545_v14 = vld [vmem:[#allocation8 + $0x18] sm:$0xff]  ;;  %3070 = vmatprep.subr.mxu0 %v3474_v16  ;;  %3081 = vmatprep.subr.mxu1 %v3474_v16  ;;  %v3551_v17 = vld [vmem:[#allocation8 + $0x10] sm:$0xff]  ;;  %v3559_v19 = vld [vmem:[#allocation8 + $0x8] sm:$0xff]  ;;  %vm3475_vm1 = vmmov 0  }
  0x33   :  { %85 = vadd.xlane.f32.xlu0 %v84_v2  ;;  %v3547_v15 = vld [vmem:[#allocation8 + $0x38] sm:$0xff]  ;;  %v3553_v18 = vld [vmem:[#allocation8 + $0x30] sm:$0xff]  ;;  %3071 = vmatpush3.msra.mxu0 %v3545_v14  ;;  %v3561_v20 = vld [vmem:[#allocation8 + $0x28] sm:$0xff]  ;;  %s3476_s2 = smov 120   ;;  %vm712_vm2 = vcmask 64512   ;;  %s3478_s3 = smov 112  }
  0x34   :  { %3082 = vmatpush3.msra.mxu1 %v3547_v15  ;;  %3072 = vmatprep.subr.mxu0 %v3474_v16  ;;  %v3567_v21 = vld [vmem:[#allocation8] sm:$0xff]  ;;  %v134_v35 = vld [vmem:[#allocation8 + $0x58] sm:$0xff]  ;;  %v133_v37 = vld [vmem:[#allocation8 + $0x50] sm:$0xff]  ;;  %vm2810_vm5 = vcmask 523264   ;;  %s3479_s9 = smov [#allocation10]  }
  0x35   :  { %3083 = vmatprep.subr.mxu1 %v3474_v16  ;;  %3073 = vmatpush3.msra.mxu0 %v3551_v17  ;;  %v3569_v22 = vld [vmem:[#allocation8 + $0x20] sm:$0xff]  ;;  %v138_v36 = vld [vmem:[#allocation8 + $0x78] sm:$0xff]  ;;  %v137_v38 = vld [vmem:[#allocation8 + $0x70] sm:$0xff]  ;;  %s2901_s10 = sshll.u32 %s3479_s9, 4  ;;  %s2902_s10 = int_to_ptr.vmem [resolvable:$true] %s2901_s10 }
  0x36   :  { %3084 = vmatpush3.msra.mxu1 %v3553_v18  ;;  %3074 = vmatprep.subr.mxu0 %v3474_v16  ;;  %v2915_v30 = vld [vmem:[#allocation8 + $0x123] ss:$0 sm:$0xff]  ;;  %v2916_v32 = vld [vmem:[#allocation8 + $0x124] ss:$0 sm:$0xff]  ;;  %v132_v39 = vld [vmem:[#allocation8 + $0x48] sm:$0xff]  ;;  %s3440_s11 = scalar_lea.vmem %s2902_s10, 256  ;;  %p3445_p7 = scmp.lt.s32.totalorder %s2902_s10, %s2902_s10 }
  0x37   :  { %88 = vadd.xlane.f32.xlu0 %v87_v3  ;;  %3085 = vmatprep.subr.mxu1 %v3474_v16  ;;  %v136_v40 = vld [vmem:[#allocation8 + $0x68] sm:$0xff]  ;;  %v131_v41 = vld [vmem:[#allocation8 + $0x40] sm:$0xff]  ;;  %v141_v55 = vld [vmem:[#allocation8 + $0x110] sm:$0xff]  ;;  %p3441_p6 = scmp.ne.s32.totalorder %s2902_s10, %s3440_s11  ;;  %p3446_p8 = scmp.lt.s32.totalorder %s3440_s11, %s3440_s11 }
  0x38   :  { %3075 = vmatpush3.msra.mxu0 %v3559_v19  ;;  %3086 = vmatpush3.msra.mxu1 %v3561_v20  ;;  %v135_v42 = vld [vmem:[#allocation8 + $0x60] sm:$0xff]  ;;  %v140_v48 = vld [vmem:[#allocation8 + $0x108] sm:$0xff]  ;;  %v142_v59 = vld [vmem:[#allocation8 + $0x118] sm:$0xff] }
  0x39   :  { %3076 = vmatprep.subr.mxu0 %v3474_v16  ;;  %3087 = vmatprep.subr.mxu1 %v3474_v16  ;;  %v139_v47 = vld [vmem:[#allocation8 + $0x100] sm:$0xff]  ;;  %p3447_p9 = por %p3446_p8, %p3445_p7 }
  0x3a   :  { %3077 = vmatpush3.msra.mxu0 %v3567_v21  ;;  %3088 = vmatpush3.msra.mxu1 %v3569_v22 }
  0x3b   :  { %3078 = vmatprep.mubr.msk.f32.mxu0 %vm3475_vm1, %v3474_v16  ;;  %3089 = vmatprep.mubr.msk.f32.mxu1 %vm3475_vm1, %v3474_v16  ;;  %p3448_p10 = pnand %p3447_p9, %p3441_p6 }
  0x3c   :  { %3092 = vmatprep.subr.mxu0 %v3474_v16  ;;  %3103 = vmatprep.subr.mxu1 %v3474_v16 }
  0xbc   :  { %v86_v4 = vpop.xlane.xlu0 %85 }
  0xbd   :  { %v91_v5 = vmul.f32 0.03125, %v86_v4 }
  0xbf   :  { %v93_v6 = vsub.f32 %v3529_v0, %v91_v5 }
  0xc0   :  { %v89_v7 = vpop.xlane.xlu0 %88 }
  0xc1   :  { %v92_v8 = vmul.f32 0.03125, %v89_v7  ;;  %v95_v9 = vmul.f32 %v93_v6, %v93_v6 }
  0xc3   :  { %v3539_v10 = vsub.f32 %v3531_v1, %v92_v8  ;;  %v97_v11 = vsel %vm83_vm0, %v95_v9, 0.0 }
  0xc4   :  { %98 = vadd.xlane.f32.xlu1 %v97_v11 }
  0xc5   :  { %v96_v12 = vmul.f32 %v3539_v10, %v3539_v10 }
  0xc7   :  { %v100_v13 = vsel %vm83_vm0, %v96_v12, 0.0 }
  0xc8   :  { %101 = vadd.xlane.f32.xlu1 %v100_v13 }
 0x14d   :  { %v99_v23 = vpop.xlane.xlu1 %98 }
 0x14e   :  { %v103_v24 = vmul.f32 0.03125, %v99_v23 }
 0x150   :  { %v105_v25 = vadd.f32 1e-05, %v103_v24  ;;  %v1334_v24 = vld [vmem:[#allocation7] sm:$0xff] }
 0x151   :  { %v102_v26 = vpop.xlane.xlu1 %101 }
 0x152   :  { %3320 = vrsqrt.f32 %v105_v25  ;;  %v104_v27 = vmul.f32 0.03125, %v102_v26 }
 0x154   :  { %v106_v28 = vadd.f32 1e-05, %v104_v27  ;;  %v3477_v27 = vmov -1e+30  }
 0x156   :  { %3322 = vrsqrt.f32 %v106_v28 }
 0x15f   :  { %v3321_v29 = vpop.eup %3320 }
 0x160   :  { %v109_v31 = vmul.f32 %v3321_v29, %v93_v6 }
 0x162   :  { %v115_v33 = vmul.f32 %v2915_v30, %v109_v31  ;;  %v1335_v31 = vld [vmem:[#allocation7 + $0x8] sm:$0xff] }
 0x163   :  { %v3323_v43 = vpop.eup %3322 }
 0x164   :  { %v121_v34 = vadd.f32 %v2916_v32, %v115_v33  ;;  %v110_v44 = vmul.f32 %v3323_v43, %v3539_v10 }
 0x166   :  { %3079 = vmatmul.mubr.msk.f32.vlgmr.msra.gmra.mxu0 %vm83_vm0, %v121_v34  ;;  %3090 = vmatmul.mubr.msk.f32.vlgmr.msra.gmra.mxu1 %vm83_vm0, %v121_v34  ;;  %v116_v45 = vmul.f32 %v2915_v30, %v110_v44  ;;  %v1337_v44 = vld [vmem:[#allocation7 + $0x18] sm:$0xff] }
 0x167   :  { %3093 = vmatpush3.msra.mxu0 %v134_v35  ;;  %3104 = vmatpush3.msra.mxu1 %v138_v36 }
 0x168   :  { %3094 = vmatprep.subr.mxu0 %v3474_v16  ;;  %3105 = vmatprep.subr.mxu1 %v3474_v16  ;;  %v122_v46 = vadd.f32 %v2916_v32, %v116_v45 }
 0x169   :  { %3095 = vmatpush3.msra.mxu0 %v133_v37  ;;  %3106 = vmatpush3.msra.mxu1 %v137_v38 }
 0x16a   :  { %3096 = vmatprep.subr.mxu0 %v3474_v16  ;;  %3107 = vmatprep.subr.mxu1 %v3474_v16 }
 0x16b   :  { %3097 = vmatpush3.msra.mxu0 %v132_v39  ;;  %3108 = vmatpush3.msra.mxu1 %v136_v40 }
 0x16c   :  { %3098 = vmatprep.subr.mxu0 %v3474_v16  ;;  %3109 = vmatprep.subr.mxu1 %v3474_v16 }
 0x16d   :  { %3099 = vmatpush3.msra.mxu0 %v131_v41  ;;  %3100 = vmatprep.mubr.msk.f32.mxu0 %vm3475_vm1, %v3474_v16 }
 0x16e   :  { %3110 = vmatpush3.msra.mxu1 %v135_v42  ;;  %3111 = vmatprep.mubr.msk.f32.mxu1 %vm3475_vm1, %v3474_v16 }
 0x16f   :  { %3101 = vmatmul.mubr.msk.f32.vlgmr.msra.gmra.mxu0 %vm83_vm0, %v121_v34  ;;  %3112 = vmatmul.mubr.msk.f32.vlgmr.msra.gmra.mxu1 %vm83_vm0, %v121_v34 }
 0x170   :  { %3114 = vmatprep.subr.mxu0 %v3474_v16  ;;  %3125 = vmatprep.subr.mxu1 %v3474_v16 }
 0x171   :  { %3115 = vmatpush3.msra.mxu0 %v3545_v14  ;;  %3126 = vmatpush3.msra.mxu1 %v3547_v15 }
 0x172   :  { %3116 = vmatprep.subr.mxu0 %v3474_v16  ;;  %3127 = vmatprep.subr.mxu1 %v3474_v16 }
 0x173   :  { %3117 = vmatpush3.msra.mxu0 %v3551_v17  ;;  %3128 = vmatpush3.msra.mxu1 %v3553_v18 }
 0x174   :  { %3118 = vmatprep.subr.mxu0 %v3474_v16  ;;  %3129 = vmatprep.subr.mxu1 %v3474_v16 }
 0x175   :  { %3119 = vmatpush3.msra.mxu0 %v3559_v19  ;;  %3130 = vmatpush3.msra.mxu1 %v3561_v20 }
 0x176   :  { %3120 = vmatprep.subr.mxu0 %v3474_v16  ;;  %3131 = vmatprep.subr.mxu1 %v3474_v16 }
 0x177   :  { %3121 = vmatpush3.msra.mxu0 %v3567_v21  ;;  %3122 = vmatprep.mubr.msk.f32.mxu0 %vm3475_vm1, %v3474_v16 }
 0x178   :  { %3132 = vmatpush3.msra.mxu1 %v3569_v22  ;;  %3133 = vmatprep.mubr.msk.f32.mxu1 %vm3475_vm1, %v3474_v16  ;;  %v75_v22 = vld [vmem:[#allocation5] sm:$0xff] }
 0x179   :  { %3123 = vmatmul.mubr.msk.f32.vlgmr.msra.gmra.mxu0 %vm83_vm0, %v122_v46  ;;  %3134 = vmatmul.mubr.msk.f32.vlgmr.msra.gmra.mxu1 %vm83_vm0, %v122_v46  ;;  %vm77_vm3 = vcmp.ne.s32.totalorder %v75_v22, 0 }
 0x17a   :  { %3136 = vmatprep.subr.mxu0 %v3474_v16  ;;  %3147 = vmatprep.subr.mxu1 %v3474_v16  ;;  %v79_v28 = vsel %vm77_vm3, 0.0, %v3477_v27 }
 0x17b   :  { %3137 = vmatpush3.msra.mxu0 %v134_v35  ;;  %3148 = vmatpush3.msra.mxu1 %v138_v36 }
 0x17c   :  { %3138 = vmatprep.subr.mxu0 %v3474_v16  ;;  %3149 = vmatprep.subr.mxu1 %v3474_v16 }
 0x17d   :  { %3139 = vmatpush3.msra.mxu0 %v133_v37  ;;  %3150 = vmatpush3.msra.mxu1 %v137_v38 }
 0x17e   :  { %3140 = vmatprep.subr.mxu0 %v3474_v16  ;;  %3151 = vmatprep.subr.mxu1 %v3474_v16 }
 0x17f   :  { %3141 = vmatpush3.msra.mxu0 %v132_v39  ;;  %3152 = vmatpush3.msra.mxu1 %v136_v40 }
 0x180   :  { %3142 = vmatprep.subr.mxu0 %v3474_v16  ;;  %3153 = vmatprep.subr.mxu1 %v3474_v16 }
 0x181   :  { %3143 = vmatpush3.msra.mxu0 %v131_v41  ;;  %3144 = vmatprep.mubr.msk.f32.mxu0 %vm3475_vm1, %v3474_v16 }
 0x182   :  { %3154 = vmatpush3.msra.mxu1 %v135_v42  ;;  %3155 = vmatprep.mubr.msk.f32.mxu1 %vm3475_vm1, %v3474_v16  ;;  %v1336_v42 = vld [vmem:[#allocation7 + $0x10] sm:$0xff] }
 0x183   :  { %3145 = vmatmul.mubr.msk.f32.vlgmr.msra.gmra.mxu0 %vm83_vm0, %v122_v46  ;;  %3156 = vmatmul.mubr.msk.f32.vlgmr.msra.gmra.mxu1 %vm83_vm0, %v122_v46 }
 0x184   :  { %3158 = vmatprep.subr.mxu0 %v3474_v16  ;;  %3160 = vmatprep.mubr.msk.f32.mxu0 %vm3475_vm1, %v3474_v16 }
 0x185   :  { %3173 = vmatprep.subr.mxu1 %v3474_v16  ;;  %3175 = vmatprep.mubr.msk.f32.mxu1 %vm3475_vm1, %v3474_v16 }
 0x226   :  { %v212_v49 = vpop.f32.mrf.mxu0  ;;  %v282_v50 = vpop.f32.mrf.mxu1 }
 0x227   :  { %v3640_v51 = vadd.f32 %v212_v49, %v139_v47  ;;  %v3642_v52 = vadd.f32 %v282_v50, %v140_v48 }
 0x228   :  { %v3080_v53 = vpop.f32.mrf.mxu0  ;;  %v3091_v54 = vpop.f32.mrf.mxu1 }
 0x229   :  { %710 = vrot.lane.b32.xlu0 %v3640_v51, %s3476_s2  ;;  %788 = vrot.lane.b32.xlu1 %v3642_v52, %s3476_s2  ;;  %v1338_v54 = vld [vmem:[#allocation7 + $0x20] sm:$0xff] }
 0x22f   :  { %v352_v56 = vpop.f32.mrf.mxu0  ;;  %v422_v57 = vpop.f32.mrf.mxu1 }
 0x230   :  { %v3646_v58 = vadd.f32 %v352_v56, %v141_v55  ;;  %v3649_v62 = vadd.f32 %v422_v57, %v142_v59  ;;  %v1339_v56 = vld [vmem:[#allocation7 + $0x28] sm:$0xff] }
 0x231   :  { %v3102_v60 = vpop.f32.mrf.mxu0  ;;  %v3113_v61 = vpop.f32.mrf.mxu1 }
 0x232   :  { %865 = vrot.lane.b32.xlu1 %v3646_v58, %s3476_s2 }
 0x236   :  { %942 = vrot.lane.b32.xlu1 %v3649_v62, %s3476_s2 }
 0x239   :  { %v495_v63 = vpop.f32.mrf.mxu0  ;;  %v565_v2 = vpop.f32.mrf.mxu1 }
 0x23a   :  { %v3652_v3 = vadd.f32 %v495_v63, %v139_v47  ;;  %v3654_v4 = vadd.f32 %v565_v2, %v140_v48  ;;  %v76_v47 = vld [vmem:[#allocation5 + $0x8] sm:$0xff] }
 0x23b   :  { %v3124_v5 = vpop.f32.mrf.mxu0  ;;  %v3135_v6 = vpop.f32.mrf.mxu1  ;;  %vm78_vm4 = vcmp.ne.s32.totalorder %v76_v47, 0 }
 0x23c   :  { %1096 = vrot.lane.b32.xlu1 %v3654_v4, %s3476_s2  ;;  %1019 = vrot.lane.b32.xlu0 %v3652_v3, %s3476_s2  ;;  %v80_v5 = vsel %vm78_vm4, 0.0, %v3477_v27 }
 0x243   :  { %v635_v7 = vpop.f32.mrf.mxu0  ;;  %v705_v8 = vpop.f32.mrf.mxu1 }
 0x244   :  { %v3658_v9 = vadd.f32 %v635_v7, %v141_v55  ;;  %v3660_v10 = vadd.f32 %v705_v8, %v142_v59 }
 0x245   :  { %v3146_v11 = vpop.f32.mrf.mxu0  ;;  %v3157_v12 = vpop.f32.mrf.mxu1 }
 0x246   :  { %1250 = vrot.lane.b32.xlu1 %v3660_v10, %s3476_s2  ;;  %1173 = vrot.lane.b32.xlu0 %v3658_v9, %s3476_s2 }
 0x29b   :  { %v711_v13 = vpop.permute.xlu0 %710  ;;  %v789_v14 = vpop.permute.xlu1 %788 }
 0x29c   :  { %3159 = vmatpush3.xpose.msk.msra.mxu0 %vm712_vm2, %v711_v13 }
 0x29d   :  { %3163 = vmatprep.subr.mxu0 %v3474_v16 }
 0x29f   :  { %3161 = vmatmul.mubr.msk.f32.vlgmr.msra.gmra.mxu0 %vm712_vm2, %v3640_v51 }
 0x2a0   :  { %3164 = vmatpush3.xpose.msk.msra.mxu0 %vm712_vm2, %v789_v14  ;;  %3165 = vmatprep.mubr.msk.f32.mxu0 %vm3475_vm1, %v3474_v16 }
 0x2a1   :  { %3168 = vmatprep.subr.mxu0 %v3474_v16 }
 0x2a3   :  { %3166 = vmatmul.mubr.msk.f32.vlgmr.msra.gmra.mxu0 %vm712_vm2, %v3642_v52 }
 0x2a4   :  { %v866_v15 = vpop.permute.xlu1 %865  ;;  %3170 = vmatprep.mubr.msk.f32.mxu0 %vm3475_vm1, %v3474_v16 }
 0x2a5   :  { %3169 = vmatpush3.xpose.msk.msra.mxu0 %vm712_vm2, %v866_v15 }
 0x2a6   :  { %3178 = vmatprep.subr.mxu0 %v3474_v16 }
 0x2a8   :  { %v943_v17 = vpop.permute.xlu1 %942  ;;  %3171 = vmatmul.mubr.msk.f32.vlgmr.msra.gmra.mxu0 %vm712_vm2, %v3646_v58 }
 0x2a9   :  { %3174 = vmatpush3.xpose.msk.msra.mxu1 %vm712_vm2, %v943_v17  ;;  %3180 = vmatprep.mubr.msk.f32.mxu0 %vm3475_vm1, %v3474_v16  ;;  %v1341_v17 = vld [vmem:[#allocation7 + $0x38] sm:$0xff] }
 0x2aa   :  { %3183 = vmatprep.subr.mxu1 %v3474_v16 }
 0x2ac   :  { %3176 = vmatmul.mubr.msk.f32.vlgmr.msra.gmra.mxu1 %vm712_vm2, %v3649_v62 }
 0x2ad   :  { %3185 = vmatprep.mubr.msk.f32.mxu1 %vm3475_vm1, %v3474_v16 }
 0x2ae   :  { %v1097_v18 = vpop.permute.xlu1 %1096  ;;  %v1020_v19 = vpop.permute.xlu0 %1019 }
 0x2af   :  { %3179 = vmatpush3.xpose.msk.msra.mxu0 %vm712_vm2, %v1020_v19  ;;  %3184 = vmatpush3.xpose.msk.msra.mxu1 %vm712_vm2, %v1097_v18  ;;  %v1340_v19 = vld [vmem:[#allocation7 + $0x30] sm:$0xff] }
 0x2b0   :  { %3193 = vmatprep.subr.mxu1 %v3474_v16  ;;  %3188 = vmatprep.subr.mxu0 %v3474_v16 }
 0x2b2   :  { %3181 = vmatmul.mubr.msk.f32.vlgmr.msra.gmra.mxu0 %vm712_vm2, %v3652_v3  ;;  %3186 = vmatmul.mubr.msk.f32.vlgmr.msra.gmra.mxu1 %vm712_vm2, %v3654_v4 }
 0x2b3   :  { %3190 = vmatprep.mubr.msk.f32.mxu0 %vm3475_vm1, %v3474_v16  ;;  %3195 = vmatprep.mubr.msk.f32.mxu1 %vm3475_vm1, %v3474_v16 }
 0x2b8   :  { %v1251_v20 = vpop.permute.xlu1 %1250  ;;  %v1174_v21 = vpop.permute.xlu0 %1173 }
 0x2b9   :  { %3189 = vmatpush3.xpose.msk.msra.mxu0 %vm712_vm2, %v1174_v21  ;;  %3194 = vmatpush3.xpose.msk.msra.mxu1 %vm712_vm2, %v1251_v20 }
 0x2ba   :  { %3203 = vmatprep.subr.mxu1 %v3474_v16  ;;  %3198 = vmatprep.subr.mxu0 %v3474_v16 }
 0x2bc   :  { %3191 = vmatmul.mubr.msk.f32.vlgmr.msra.gmra.mxu0 %vm712_vm2, %v3658_v9  ;;  %3196 = vmatmul.mubr.msk.f32.vlgmr.msra.gmra.mxu1 %vm712_vm2, %v3660_v10 }
 0x2bd   :  { %3200 = vmatprep.mubr.msk.f32.mxu0 %vm3475_vm1, %v3474_v16  ;;  %3205 = vmatprep.mubr.msk.f32.mxu1 %vm3475_vm1, %v3474_v16 }
 0x35f   :  { %v783_v23 = vpop.f32.mrf.mxu0 }
 0x360   :  { %v1326_v25 = vmul.f32 0.35355338, %v783_v23 }
 0x361   :  { %v3162_v26 = vpop.f32.mrf.mxu0 }
 0x362   :  { %v1342_v29 = vadd.f32 %v1334_v24, %v1326_v25 }
 0x363   :  { %v860_v30 = vpop.f32.mrf.mxu0 }
 0x364   :  { %v1327_v32 = vmul.f32 0.35355338, %v860_v30  ;;  %v3712_v33 = vadd.f32 %v1342_v29, %v79_v28 }
 0x365   :  { %v3167_v34 = vpop.f32.mrf.mxu0 }
 0x366   :  { %v1343_v35 = vadd.f32 %v1335_v31, %v1327_v32  ;;  %v1358_v36 = vsel %vm712_vm2, %v3712_v33, -inf }
 0x367   :  { %1359 = vmax.xlane.f32.xlu0 %v1358_v36 }
 0x368   :  { %v937_v37 = vpop.f32.mrf.mxu0  ;;  %v3716_v38 = vadd.f32 %v1343_v35, %v79_v28 }
 0x369   :  { %v1328_v41 = vmul.f32 0.35355338, %v937_v37 }
 0x36a   :  { %v3172_v39 = vpop.f32.mrf.mxu0  ;;  %v1361_v40 = vsel %vm712_vm2, %v3716_v38, -inf }
 0x36b   :  { %1362 = vmax.xlane.f32.xlu1 %v1361_v40  ;;  %v1344_v48 = vadd.f32 %v1336_v42, %v1328_v41 }
 0x36c   :  { %v1014_v43 = vpop.f32.mrf.mxu1 }
 0x36d   :  { %v1329_v45 = vmul.f32 0.35355338, %v1014_v43  ;;  %v1352_v61 = vadd.f32 %v1344_v48, %v79_v28 }
 0x36e   :  { %v3177_v46 = vpop.f32.mrf.mxu1 }
 0x36f   :  { %v1345_v49 = vadd.f32 %v1337_v44, %v1329_v45  ;;  %v1364_v11 = vsel %vm712_vm2, %v1352_v61, -inf }
 0x371   :  { %v1353_v50 = vadd.f32 %v1345_v49, %v79_v28 }
 0x372   :  { %v1091_v53 = vpop.f32.mrf.mxu0  ;;  %v1168_v55 = vpop.f32.mrf.mxu1 }
 0x373   :  { %v1330_v57 = vmul.f32 0.35355338, %v1091_v53  ;;  %v1331_v59 = vmul.f32 0.35355338, %v1168_v55  ;;  %v1367_v60 = vsel %vm712_vm2, %v1353_v50, -inf }
 0x374   :  { %v3182_v63 = vpop.f32.mrf.mxu0  ;;  %v3187_v2 = vpop.f32.mrf.mxu1  ;;  %1368 = vmax.xlane.f32.xlu0 %v1367_v60 }
 0x375   :  { %v1346_v6 = vadd.f32 %v1338_v54, %v1330_v57  ;;  %v1347_v7 = vadd.f32 %v1339_v56, %v1331_v59 }
 0x377   :  { %v1355_v8 = vadd.f32 %v1347_v7, %v80_v5  ;;  %v1354_v12 = vadd.f32 %v1346_v6, %v80_v5 }
 0x378   :  { %1365 = vmax.xlane.f32.xlu0 %v1364_v11 }
 0x379   :  { %v1373_v13 = vsel %vm712_vm2, %v1355_v8, -inf  ;;  %v1370_v14 = vsel %vm712_vm2, %v1354_v12, -inf }
 0x37a   :  { %1374 = vmax.xlane.f32.xlu1 %v1373_v13 }
 0x37c   :  { %v1322_v15 = vpop.f32.mrf.mxu1  ;;  %v1245_v18 = vpop.f32.mrf.mxu0  ;;  %1371 = vmax.xlane.f32.xlu0 %v1370_v14 }
 0x37d   :  { %v1333_v20 = vmul.f32 0.35355338, %v1322_v15  ;;  %v1332_v21 = vmul.f32 0.35355338, %v1245_v18 }
 0x37e   :  { %v3192_v22 = vpop.f32.mrf.mxu0  ;;  %v3197_v23 = vpop.f32.mrf.mxu1 }
 0x37f   :  { %v1349_v24 = vadd.f32 %v1341_v17, %v1333_v20  ;;  %v1348_v25 = vadd.f32 %v1340_v19, %v1332_v21 }
 0x381   :  { %v1357_v26 = vadd.f32 %v1349_v24, %v80_v5  ;;  %v1356_v27 = vadd.f32 %v1348_v25, %v80_v5 }
 0x383   :  { %v1379_v28 = vsel %vm712_vm2, %v1357_v26, -inf  ;;  %v1376_v29 = vsel %vm712_vm2, %v1356_v27, -inf }
 0x384   :  { %1380 = vmax.xlane.f32.xlu1 %v1379_v28  ;;  %1377 = vmax.xlane.f32.xlu0 %v1376_v29 }
 0x395   :  { %1522 = vrot.lane.b32.xlu1 %v3642_v52, %s3478_s3 }
 0x399   :  { %1598 = vrot.lane.b32.xlu1 %v3646_v58, %s3478_s3 }
 0x39a   :  { %1446 = vrot.lane.b32.xlu0 %v3640_v51, %s3478_s3 }
 0x39d   :  { %1674 = vrot.lane.b32.xlu1 %v3649_v62, %s3478_s3 }
 0x39e   :  { %1750 = vrot.lane.b32.xlu0 %v3652_v3, %s3478_s3 }
 0x3a1   :  { %1826 = vrot.lane.b32.xlu1 %v3654_v4, %s3478_s3 }
 0x3f0   :  { %v1360_v30 = vpop.xlane.xlu0 %1359 }
 0x3f1   :  { %v1382_v31 = vsub.f32 %v3712_v33, %v1360_v30 }
 0x3f3   :  { %v1390_v32 = vmul.f32 1.442695, %v1382_v31 }
 0x3f4   :  { %v1363_v52 = vpop.xlane.xlu1 %1362 }
 0x3f5   :  { %3324 = vpow2.f32 %v1390_v32  ;;  %v1383_v58 = vsub.f32 %v3716_v38, %v1363_v52 }
 0x3f7   :  { %v1392_v34 = vmul.f32 1.442695, %v1383_v58 }
 0x3f9   :  { %3326 = vpow2.f32 %v1392_v34 }
 0x3fd   :  { %v1369_v51 = vpop.xlane.xlu0 %1368 }
 0x3fe   :  { %v1385_v35 = vsub.f32 %v1353_v50, %v1369_v51 }
 0x400   :  { %v1396_v36 = vmul.f32 1.442695, %v1385_v35 }
 0x401   :  { %v1366_v62 = vpop.xlane.xlu0 %1365 }
 0x402   :  { %v3740_v37 = vpop.eup %3324  ;;  %3328 = vpow2.f32 %v1396_v36  ;;  %v1384_v3 = vsub.f32 %v1352_v61, %v1366_v62 }
 0x403   :  { %v1375_v39 = vpop.xlane.xlu1 %1374  ;;  %v1406_v4 = vsel %vm712_vm2, %v3740_v37, 0.0 }
 0x404   :  { %v1387_v33 = vsub.f32 %v1355_v8, %v1375_v39  ;;  %v1394_v40 = vmul.f32 1.442695, %v1384_v3  ;;  %1407 = vadd.xlane.f32.xlu0 %v1406_v4  ;;  %v2054_v3 = vld [vmem:[#allocation8 + $0x80] sm:$0xff]  ;;  %v2055_v39 = vld [vmem:[#allocation8 + $0x88] sm:$0xff]  ;;  %v2056_v4 = vld [vmem:[#allocation8 + $0x90] sm:$0xff] }
 0x405   :  { %v1372_v41 = vpop.xlane.xlu0 %1371 }
 0x406   :  { %v3327_v42 = vpop.eup %3326  ;;  %v1400_v38 = vmul.f32 1.442695, %v1387_v33  ;;  %3330 = vpow2.f32 %v1394_v40  ;;  %v1386_v43 = vsub.f32 %v1354_v12, %v1372_v41  ;;  %v2057_v41 = vld [vmem:[#allocation8 + $0x98] sm:$0xff] }
 0x407   :  { %v1409_v44 = vsel %vm712_vm2, %v3327_v42, 0.0 }
 0x408   :  { %3332 = vpow2.f32 %v1400_v38  ;;  %v1398_v45 = vmul.f32 1.442695, %v1386_v43  ;;  %1410 = vadd.xlane.f32.xlu1 %v1409_v44 }
 0x40a   :  { %3334 = vpow2.f32 %v1398_v45 }
 0x40d   :  { %v1381_v46 = vpop.xlane.xlu1 %1380  ;;  %v1378_v47 = vpop.xlane.xlu0 %1377 }
 0x40e   :  { %v1389_v48 = vsub.f32 %v1357_v26, %v1381_v46  ;;  %v1388_v49 = vsub.f32 %v1356_v27, %v1378_v47 }
 0x40f   :  { %v3329_v50 = vpop.eup %3328 }
 0x410   :  { %v1404_v53 = vmul.f32 1.442695, %v1389_v48  ;;  %v1402_v54 = vmul.f32 1.442695, %v1388_v49  ;;  %v1415_v55 = vsel %vm712_vm2, %v3329_v50, 0.0 }
 0x411   :  { %v1523_v56 = vpop.permute.xlu1 %1522  ;;  %v1447_v57 = vpop.permute.xlu0 %1446  ;;  %1416 = vadd.xlane.f32.xlu1 %v1415_v55 }
 0x412   :  { %3336 = vpow2.f32 %v1404_v53  ;;  %3199 = vmatpush3.msra.mxu0 %v1447_v57  ;;  %3204 = vmatpush3.msra.mxu1 %v1523_v56 }
 0x413   :  { %v3331_v59 = vpop.eup %3330  ;;  %3338 = vpow2.f32 %v1402_v54  ;;  %3208 = vmatprep.subr.mxu0 %v3474_v16  ;;  %3213 = vmatprep.subr.mxu1 %v3474_v16 }
 0x414   :  { %v1412_v60 = vsel %vm712_vm2, %v3331_v59, 0.0 }
 0x415   :  { %v3333_v61 = vpop.eup %3332  ;;  %1413 = vadd.xlane.f32.xlu0 %v1412_v60  ;;  %v1599_v12 = vpop.permute.xlu1 %1598 }
 0x416   :  { %v1421_v63 = vsel %vm712_vm2, %v3333_v61, 0.0  ;;  %v1751_v14 = vpop.permute.xlu0 %1750 }
 0x417   :  { %v3335_v2 = vpop.eup %3334  ;;  %1422 = vadd.xlane.f32.xlu1 %v1421_v63 }
 0x418   :  { %v1418_v5 = vsel %vm712_vm2, %v3335_v2, 0.0 }
 0x419   :  { %1419 = vadd.xlane.f32.xlu0 %v1418_v5  ;;  %v1675_v13 = vpop.permute.xlu1 %1674 }
 0x41d   :  { %v1827_v15 = vpop.permute.xlu1 %1826 }
 0x41f   :  { %v3751_v6 = vpop.eup %3336 }
 0x420   :  { %v3753_v7 = vpop.eup %3338  ;;  %v1427_v8 = vsel %vm712_vm2, %v3751_v6, 0.0 }
 0x421   :  { %1428 = vadd.xlane.f32.xlu1 %v1427_v8  ;;  %v1424_v11 = vsel %vm712_vm2, %v3753_v7, 0.0 }
 0x422   :  { %1425 = vadd.xlane.f32.xlu0 %v1424_v11 }
 0x432   :  { %1978 = vrot.lane.b32.xlu1 %v3660_v10, %s3478_s3 }
 0x438   :  { %1902 = vrot.lane.b32.xlu0 %v3658_v9, %s3478_s3 }
 0x48d   :  { %v1408_v17 = vpop.xlane.xlu0 %1407 }
 0x48e   :  { %3340 = vrcp.f32 %v1408_v17 }
 0x491   :  { %v1411_v18 = vpop.xlane.xlu1 %1410 }
 0x492   :  { %3342 = vrcp.f32 %v1411_v18 }
 0x49a   :  { %v1417_v19 = vpop.xlane.xlu1 %1416 }
 0x49b   :  { %v3341_v20 = vpop.eup %3340  ;;  %3344 = vrcp.f32 %v1417_v19 }
 0x49c   :  { %v1431_v21 = vmul.f32 %v3341_v20, %v3740_v37 }
 0x49e   :  { %v1414_v22 = vpop.xlane.xlu0 %1413  ;;  %3201 = vmatmul.mubr.msk.f32.vlgmr.msra.gmra.mxu0 %vm712_vm2, %v1431_v21 }
 0x49f   :  { %v3343_v10 = vpop.eup %3342  ;;  %3346 = vrcp.f32 %v1414_v22  ;;  %3209 = vmatpush3.msra.mxu0 %v1599_v12  ;;  %3210 = vmatprep.mubr.msk.f32.mxu0 %vm3475_vm1, %v3474_v16 }
 0x4a0   :  { %v1423_v9 = vpop.xlane.xlu1 %1422  ;;  %v1433_v23 = vmul.f32 %v3343_v10, %v3327_v42  ;;  %3218 = vmatprep.subr.mxu0 %v3474_v16 }
 0x4a1   :  { %3348 = vrcp.f32 %v1423_v9 }
 0x4a2   :  { %v1420_v24 = vpop.xlane.xlu0 %1419  ;;  %3206 = vmatmul.mubr.msk.f32.vlgmr.msra.gmra.mxu1 %vm712_vm2, %v1433_v23 }
 0x4a3   :  { %3350 = vrcp.f32 %v1420_v24  ;;  %3214 = vmatpush3.msra.mxu1 %v1675_v13  ;;  %3215 = vmatprep.mubr.msk.f32.mxu1 %vm3475_vm1, %v3474_v16 }
 0x4a4   :  { %3223 = vmatprep.subr.mxu1 %v3474_v16 }
 0x4a8   :  { %v3345_v25 = vpop.eup %3344 }
 0x4a9   :  { %v1437_v26 = vmul.f32 %v3345_v25, %v3329_v50 }
 0x4aa   :  { %v1429_v27 = vpop.xlane.xlu1 %1428 }
 0x4ab   :  { %3352 = vrcp.f32 %v1429_v27  ;;  %v1426_v28 = vpop.xlane.xlu0 %1425  ;;  %3216 = vmatmul.mubr.msk.f32.vlgmr.msra.gmra.mxu1 %vm712_vm2, %v1437_v26 }
 0x4ac   :  { %v3347_v29 = vpop.eup %3346  ;;  %3354 = vrcp.f32 %v1426_v28  ;;  %3224 = vmatpush3.msra.mxu1 %v1827_v15  ;;  %3225 = vmatprep.mubr.msk.f32.mxu1 %vm3475_vm1, %v3474_v16  ;;  %v2957_v15 = vld [vmem:[#allocation8 + $0x120] ss:$0 sm:$0xff] }
 0x4ad   :  { %3233 = vmatprep.subr.mxu1 %v3474_v16  ;;  %v1435_v30 = vmul.f32 %v3347_v29, %v3331_v59 }
 0x4ae   :  { %v3349_v31 = vpop.eup %3348  ;;  %v1979_v58 = vpop.permute.xlu1 %1978 }
 0x4af   :  { %3211 = vmatmul.mubr.msk.f32.vlgmr.msra.gmra.mxu0 %vm712_vm2, %v1435_v30  ;;  %v1441_v32 = vmul.f32 %v3349_v31, %v3333_v61  ;;  %v1903_v51 = vpop.permute.xlu0 %1902 }
 0x4b0   :  { %v3351_v52 = vpop.eup %3350  ;;  %3219 = vmatpush3.msra.mxu0 %v1751_v14  ;;  %3220 = vmatprep.mubr.msk.f32.mxu0 %vm3475_vm1, %v3474_v16 }
 0x4b1   :  { %3226 = vmatmul.mubr.msk.f32.vlgmr.msra.gmra.mxu1 %vm712_vm2, %v1441_v32  ;;  %3228 = vmatprep.subr.mxu0 %v3474_v16  ;;  %v1439_v34 = vmul.f32 %v3351_v52, %v3335_v2 }
 0x4b2   :  { %3234 = vmatpush3.msra.mxu1 %v1979_v58  ;;  %3235 = vmatprep.mubr.msk.f32.mxu1 %vm3475_vm1, %v3474_v16 }
 0x4b3   :  { %3221 = vmatmul.mubr.msk.f32.vlgmr.msra.gmra.mxu0 %vm712_vm2, %v1439_v34  ;;  %3243 = vmatprep.subr.mxu1 %v3474_v16 }
 0x4b4   :  { %3229 = vmatpush3.msra.mxu0 %v1903_v51  ;;  %3230 = vmatprep.mubr.msk.f32.mxu0 %vm3475_vm1, %v3474_v16 }
 0x4b5   :  { %3238 = vmatprep.subr.mxu0 %v3474_v16 }
 0x4b8   :  { %v3353_v35 = vpop.eup %3352 }
 0x4b9   :  { %v3355_v36 = vpop.eup %3354  ;;  %v1445_v62 = vmul.f32 %v3353_v35, %v3751_v6 }
 0x4ba   :  { %v1443_v37 = vmul.f32 %v3355_v36, %v3753_v7 }
 0x4bb   :  { %3236 = vmatmul.mubr.msk.f32.vlgmr.msra.gmra.mxu1 %vm712_vm2, %v1445_v62 }
 0x4bc   :  { %3231 = vmatmul.mubr.msk.f32.vlgmr.msra.gmra.mxu0 %vm712_vm2, %v1443_v37  ;;  %3245 = vmatprep.mubr.msk.f32.mxu1 %vm3475_vm1, %v3474_v16 }
 0x4bd   :  { %3240 = vmatprep.mubr.msk.f32.mxu0 %vm3475_vm1, %v3474_v16  ;;  %3239 = vmatpush3.msra.mxu0 %v2054_v3 }
 0x4be   :  { %3248 = vmatprep.subr.mxu0 %v3474_v16  ;;  %3244 = vmatpush3.msra.mxu1 %v2055_v39 }
 0x4bf   :  { %3253 = vmatprep.subr.mxu1 %v3474_v16 }
 0x55e   :  { %v1518_v33 = vpop.f32.mrf.mxu0 }
 0x55f   :  { %3241 = vmatmul.mubr.msk.f32.vlgmr.msra.gmra.mxu0 %vm712_vm2, %v1518_v33  ;;  %v2708_v33 = vld [vmem:[#allocation8 + $0xb8] sm:$0xff] }
 0x560   :  { %v3202_v40 = vpop.f32.mrf.mxu0  ;;  %3249 = vmatpush3.msra.mxu0 %v2056_v4  ;;  %3250 = vmatprep.mubr.msk.f32.mxu0 %vm3475_vm1, %v3474_v16 }
 0x561   :  { %3258 = vmatprep.subr.mxu0 %v3474_v16  ;;  %v2707_v40 = vld [vmem:[#allocation8 + $0xb0] sm:$0xff] }
 0x562   :  { %v1594_v42 = vpop.f32.mrf.mxu1 }
 0x563   :  { %3246 = vmatmul.mubr.msk.f32.vlgmr.msra.gmra.mxu1 %vm712_vm2, %v1594_v42  ;;  %v2705_v42 = vld [vmem:[#allocation8 + $0xa0] sm:$0xff] }
 0x564   :  { %v3207_v38 = vpop.f32.mrf.mxu1  ;;  %3254 = vmatpush3.msra.mxu1 %v2057_v41  ;;  %3255 = vmatprep.mubr.msk.f32.mxu1 %vm3475_vm1, %v3474_v16 }
 0x565   :  { %3263 = vmatprep.subr.mxu1 %v3474_v16  ;;  %v2804_v38 = vld [vmem:[#allocation8 + $0xf8] sm:$0xff] }
 0x56b   :  { %v1746_v43 = vpop.f32.mrf.mxu1 }
 0x56c   :  { %3256 = vmatmul.mubr.msk.f32.vlgmr.msra.gmra.mxu1 %vm712_vm2, %v1746_v43  ;;  %v2803_v43 = vld [vmem:[#allocation8 + $0xf0] sm:$0xff] }
 0x56d   :  { %v3217_v44 = vpop.f32.mrf.mxu1  ;;  %3264 = vmatpush3.msra.mxu1 %v2055_v39  ;;  %3265 = vmatprep.mubr.msk.f32.mxu1 %vm3475_vm1, %v3474_v16 }
 0x56e   :  { %3273 = vmatprep.subr.mxu1 %v3474_v16  ;;  %v2802_v44 = vld [vmem:[#allocation8 + $0xe8] sm:$0xff] }
 0x56f   :  { %v1670_v45 = vpop.f32.mrf.mxu0 }
 0x570   :  { %3251 = vmatmul.mubr.msk.f32.vlgmr.msra.gmra.mxu0 %vm712_vm2, %v1670_v45  ;;  %v2801_v45 = vld [vmem:[#allocation8 + $0xe0] sm:$0xff] }
 0x571   :  { %v1898_v46 = vpop.f32.mrf.mxu1  ;;  %v3212_v47 = vpop.f32.mrf.mxu0  ;;  %3259 = vmatpush3.msra.mxu0 %v2054_v3  ;;  %3260 = vmatprep.mubr.msk.f32.mxu0 %vm3475_vm1, %v3474_v16 }
 0x572   :  { %3266 = vmatmul.mubr.msk.f32.vlgmr.msra.gmra.mxu1 %vm712_vm2, %v1898_v46  ;;  %3268 = vmatprep.subr.mxu0 %v3474_v16 }
 0x573   :  { %v3227_v48 = vpop.f32.mrf.mxu1  ;;  %v1822_v49 = vpop.f32.mrf.mxu0  ;;  %3274 = vmatpush3.msra.mxu1 %v2057_v41  ;;  %3275 = vmatprep.mubr.msk.f32.mxu1 %vm3475_vm1, %v3474_v16  ;;  %v2706_v41 = vld [vmem:[#allocation8 + $0xa8] sm:$0xff] }
 0x574   :  { %3261 = vmatmul.mubr.msk.f32.vlgmr.msra.gmra.mxu0 %vm712_vm2, %v1822_v49  ;;  %3289 = vmatprep.subr.mxu1 %v2804_v38 }
 0x575   :  { %v3222_v50 = vpop.f32.mrf.mxu0  ;;  %3269 = vmatpush3.msra.mxu0 %v2056_v4  ;;  %3270 = vmatprep.mubr.msk.f32.mxu0 %vm3475_vm1, %v3474_v16 }
 0x576   :  { %3278 = vmatprep.subr.mxu0 %v2708_v33 }
 0x57b   :  { %v2050_v53 = vpop.f32.mrf.mxu1 }
 0x57c   :  { %v1974_v54 = vpop.f32.mrf.mxu0  ;;  %3276 = vmatmul.mubr.msk.f32.vlgmr.msra.gmra.mxu1 %vm712_vm2, %v2050_v53 }
 0x57d   :  { %3271 = vmatmul.mubr.msk.f32.vlgmr.msra.gmra.mxu0 %vm712_vm2, %v1974_v54  ;;  %v3237_v55 = vpop.f32.mrf.mxu1  ;;  %3290 = vmatpush3.msra.mxu1 %v2804_v38 }
 0x57e   :  { %v3232_v56 = vpop.f32.mrf.mxu0  ;;  %3279 = vmatpush3.msra.mxu0 %v2708_v33  ;;  %3291 = vmatprep.subr.mxu1 %v2803_v43  ;;  %v2958_v55 = vld [vmem:[#allocation8 + $0x125] ss:$0 sm:$0xff] }
 0x57f   :  { %3280 = vmatprep.subr.mxu0 %v2707_v40  ;;  %3292 = vmatpush3.msra.mxu1 %v2803_v43 }
 0x580   :  { %3281 = vmatpush3.msra.mxu0 %v2707_v40  ;;  %3293 = vmatprep.subr.mxu1 %v2802_v44 }
 0x581   :  { %3282 = vmatprep.subr.mxu0 %v2706_v41  ;;  %3294 = vmatpush3.msra.mxu1 %v2802_v44 }
 0x582   :  { %3283 = vmatpush3.msra.mxu0 %v2706_v41  ;;  %3295 = vmatprep.subr.mxu1 %v2801_v45 }
 0x583   :  { %3284 = vmatprep.subr.mxu0 %v2705_v42  ;;  %3296 = vmatpush3.msra.mxu1 %v2801_v45 }
 0x584   :  { %3285 = vmatpush3.msra.mxu0 %v2705_v42 }
 0x61f   :  { %v2127_v57 = vpop.f32.mrf.mxu0 }
 0x620   :  { %v2642_v6 = vsel %vm83_vm0, %v2127_v57, 0.0  ;;  %v2959_v57 = vld [vmem:[#allocation8 + $0x126] ss:$0 sm:$0xff] }
 0x621   :  { %v3242_v59 = vpop.f32.mrf.mxu0 }
 0x623   :  { %v2200_v60 = vpop.f32.mrf.mxu1 }
 0x624   :  { %v2643_v2 = vsel %vm83_vm0, %v2200_v60, 0.0 }
 0x625   :  { %v3247_v61 = vpop.f32.mrf.mxu1  ;;  %v2644_v7 = vadd.f32 %v2643_v2, %v2642_v6  ;;  %v2800_v6 = vld [vmem:[#allocation8 + $0xd8] sm:$0xff] }
 0x626   :  { %3297 = vmatprep.subr.mxu1 %v2800_v6 }
 0x627   :  { %3298 = vmatpush3.msra.mxu1 %v2800_v6 }
 0x62c   :  { %v2346_v63 = vpop.f32.mrf.mxu1 }
 0x62d   :  { %v2647_v14 = vsel %vm83_vm0, %v2346_v63, 0.0 }
 0x62e   :  { %v3257_v5 = vpop.f32.mrf.mxu1 }
 0x630   :  { %v2273_v16 = vpop.f32.mrf.mxu0 }
 0x631   :  { %v2645_v8 = vsel %vm83_vm0, %v2273_v16, 0.0  ;;  %v2798_v16 = vld [vmem:[#allocation8 + $0xc8] sm:$0xff] }
 0x632   :  { %v2646_v11 = vadd.f32 %v2645_v8, %v2644_v7  ;;  %v2492_v12 = vpop.f32.mrf.mxu1  ;;  %v3252_v13 = vpop.f32.mrf.mxu0  ;;  %v2799_v7 = vld [vmem:[#allocation8 + $0xd0] sm:$0xff]  ;;  %v2797_v8 = vld [vmem:[#allocation8 + $0xc0] sm:$0xff] }
 0x633   :  { %v2650_v23 = vsel %vm83_vm0, %v2492_v12, 0.0  ;;  %3299 = vmatprep.subr.mxu1 %v2799_v7 }
 0x634   :  { %v2648_v17 = vadd.f32 %v2647_v14, %v2646_v11  ;;  %v3267_v18 = vpop.f32.mrf.mxu1  ;;  %v2419_v19 = vpop.f32.mrf.mxu0  ;;  %3300 = vmatpush3.msra.mxu1 %v2799_v7  ;;  %v2960_v11 = vld [vmem:[#allocation8 + $0x121] ss:$0 sm:$0xff] }
 0x635   :  { %v2649_v10 = vsel %vm83_vm0, %v2419_v19, 0.0  ;;  %3301 = vmatprep.subr.mxu1 %v2798_v16  ;;  %v2963_v19 = vld [vmem:[#allocation8 + $0x122] ss:$0 sm:$0xff] }
 0x636   :  { %v3262_v20 = vpop.f32.mrf.mxu0  ;;  %v2661_v21 = vadd.f32 %v2957_v15, %v2648_v17  ;;  %v2651_v25 = vadd.f32 %v2650_v23, %v2649_v10  ;;  %3302 = vmatpush3.msra.mxu1 %v2798_v16 }
 0x637   :  { %3303 = vmatprep.subr.mxu1 %v2797_v8 }
 0x638   :  { %v3827_v22 = vadd.f32 %v2661_v21, %v3529_v0  ;;  %3304 = vmatpush3.msra.mxu1 %v2797_v8 }
 0x63a   :  { %v2667_v9 = vsel %vm83_vm0, %v3827_v22, 0.0 }
 0x63b   :  { %2668 = vadd.xlane.f32.xlu0 %v2667_v9 }
 0x63c   :  { %v2638_v24 = vpop.f32.mrf.mxu1 }
 0x63d   :  { %v2565_v26 = vpop.f32.mrf.mxu0  ;;  %v2654_v31 = vsel %vm83_vm0, %v2638_v24, 0.0 }
 0x63e   :  { %v2652_v27 = vsel %vm83_vm0, %v2565_v26, 0.0  ;;  %v3277_v28 = vpop.f32.mrf.mxu1 }
 0x63f   :  { %v2653_v29 = vadd.f32 %v2652_v27, %v2651_v25  ;;  %v3272_v30 = vpop.f32.mrf.mxu0 }
 0x641   :  { %v2655_v0 = vadd.f32 %v2654_v31, %v2653_v29 }
 0x643   :  { %v2662_v32 = vadd.f32 %v2957_v15, %v2655_v0 }
 0x645   :  { %v3836_v52 = vadd.f32 %v2662_v32, %v3531_v1 }
 0x647   :  { %v2670_v58 = vsel %vm83_vm0, %v3836_v52, 0.0 }
 0x648   :  { %2671 = vadd.xlane.f32.xlu1 %v2670_v58 }
 0x6c4   :  { %v2669_v34 = vpop.xlane.xlu0 %2668 }
 0x6c5   :  { %v2673_v51 = vmul.f32 0.03125, %v2669_v34 }
 0x6c7   :  { %v2675_v35 = vsub.f32 %v3827_v22, %v2673_v51 }
 0x6c9   :  { %v2677_v36 = vmul.f32 %v2675_v35, %v2675_v35 }
 0x6cb   :  { %v2679_v62 = vsel %vm83_vm0, %v2677_v36, 0.0 }
 0x6cc   :  { %2680 = vadd.xlane.f32.xlu0 %v2679_v62 }
 0x6d1   :  { %v2672_v37 = vpop.xlane.xlu1 %2671 }
 0x6d2   :  { %v2674_v3 = vmul.f32 0.03125, %v2672_v37 }
 0x6d4   :  { %v2676_v39 = vsub.f32 %v3836_v52, %v2674_v3 }
 0x6d6   :  { %v2678_v4 = vmul.f32 %v2676_v39, %v2676_v39 }
 0x6d8   :  { %v2682_v1 = vsel %vm83_vm0, %v2678_v4, 0.0 }
 0x6d9   :  { %2683 = vadd.xlane.f32.xlu0 %v2682_v1 }
 0x755   :  { %v2681_v46 = vpop.xlane.xlu0 %2680 }
 0x756   :  { %v2685_v47 = vmul.f32 0.03125, %v2681_v46 }
 0x758   :  { %v2687_v48 = vadd.f32 1e-05, %v2685_v47 }
 0x75a   :  { %3356 = vrsqrt.f32 %v2687_v48 }
 0x762   :  { %v2684_v49 = vpop.xlane.xlu0 %2683 }
 0x763   :  { %v2686_v50 = vmul.f32 0.03125, %v2684_v49 }
 0x765   :  { %v2688_v53 = vadd.f32 1e-05, %v2686_v50 }
 0x767   :  { %v3357_v54 = vpop.eup %3356  ;;  %3358 = vrsqrt.f32 %v2688_v53 }
 0x768   :  { %v2691_v56 = vmul.f32 %v3357_v54, %v2675_v35 }
 0x76a   :  { %v2697_v59 = vmul.f32 %v2958_v55, %v2691_v56 }
 0x76c   :  { %v2703_v60 = vadd.f32 %v2959_v57, %v2697_v59 }
 0x76e   :  { %3286 = vmatprep.mubr.msk.f32.mxu0 %vm83_vm0, %v2703_v60 }
 0x774   :  { %v3359_v61 = vpop.eup %3358 }
 0x775   :  { %v2692_v63 = vmul.f32 %v3359_v61, %v2676_v39 }
 0x777   :  { %v2698_v2 = vmul.f32 %v2958_v55, %v2692_v63 }
 0x779   :  { %v2704_v5 = vadd.f32 %v2959_v57, %v2698_v2 }
 0x77b   :  { %3287 = vmatmul.mubr.msk.f32.vlgmr.msra.gmra.mxu0 %vm83_vm0, %v2704_v5 }
 0x83b   :  { %v3288_v12 = vpop.f32.mrf.mxu0 }
 0x83c   :  { %v2792_v13 = vadd.f32 %v3288_v12, %v2960_v11 }
 0x83d   :  { %v2786_v14 = vpop.f32.mrf.mxu0 }
 0x83e   :  { %v2787_v15 = vadd.f32 %v2960_v11, %v2786_v14  ;;  %v2796_v18 = vmax.f32 %v2792_v13, 0.0 }
 0x840   :  { %v2795_v17 = vmax.f32 %v2787_v15, 0.0 }
 0x842   :  { %3305 = vmatprep.mubr.msk.f32.mxu1 %vm2810_vm5, %v2795_v17 }
 0x843   :  { %3306 = vmatmul.mubr.msk.f32.vlgmr.msra.gmra.mxu1 %vm2810_vm5, %v2796_v18 }
 0x903   :  { %v3307_v20 = vpop.f32.mrf.mxu1 }
 0x904   :  { %v2889_v21 = vadd.f32 %v3307_v20, %v2963_v19 }
 0x905   :  { %v2883_v10 = vpop.f32.mrf.mxu1 }
 0x906   :  { %v2893_v9 = vadd.f32 %v2889_v21, %v3836_v52  ;;  %v2884_v23 = vadd.f32 %v2963_v19, %v2883_v10 }
 0x908   :  { %2895 = vst.msk [vmem:[#allocation10 + $0x8] sm:$0xff] %vm83_vm0, %v2893_v9  ;;  %v2892_v24 = vadd.f32 %v2884_v23, %v3827_v22 }
 0x90a   :  { %2894 = vst.msk [vmem:[#allocation10] sm:$0xff] %vm83_vm0, %v2892_v24 }
 0x90b   :  { %3451 = shalt.err (!%p3448_p10)
}
 0x90c   :  { %2907 = dma.vmem_to_hbm [thread:$0]  %s2902_s10, 256, %s3860_s4, [#allocation4], %s3470_s20, %s3470_s20, %s3471_s21  }
 0x90d   :  { %3466 = dma.done.wait [#allocation4], 256  }
 0x90e   :  { %3467 = vsyncadd [#allocation4], 4294967040 }
 0x90f   :  { %2911 = vsyncpa [#allocation3], 1 }
 0x910   :  { %2912 = vsyncpa [#allocation6], 1 }
 0x911   :  { %2913 = vsyncpa [#allocation9], 1 }
 0x912   :  { %2914 = vsyncpa [#allocation4], 1 }

</bundles_post_ra>
